<compile_context>
chip_gen: v5e
topology: v5e:2x2
jax: 0.10.0
libtpu: 0.0.40
codegen_flags: <defaults>
</compile_context>

<pallas_src>
import functools
import math

import jax
import jax.numpy as jnp
from jax import lax
from jax.experimental import pallas as pl
from jax.experimental.pallas import tpu as pltpu


def _antideriv_tanh(x):
    ax = jnp.abs(x)
    return ax + jnp.log1p(jnp.exp(-2.0 * ax))


def _round_up(v, mult):
    return ((v + mult - 1) // mult) * mult


def _pad_axis(a, axis, target):
    pad = target - a.shape[axis]
    if pad <= 0:
        return a
    widths = [(0, 0)] * a.ndim
    widths[axis] = (0, pad)
    return jnp.pad(a, widths)


def _const_block_spec(shape, index_map):
    """Grid-invariant block: single-buffer it (double buffering buys nothing)."""
    try:
        return pl.BlockSpec(shape, index_map, pipeline_mode=pl.Buffered(1))
    except (AttributeError, TypeError):   # older jax without pipeline_mode
        return pl.BlockSpec(shape, index_map)


# --------------------------------------------------------------------------- #
# Kernels
# --------------------------------------------------------------------------- #
def _resnn_resident_kernel(xc_ref, w0_ref, b0_ref, wres_ref, bres_ref, out_ref,
                           *, n_res, h, use_bf16):
    """All residual weights VMEM-resident; layer loop inside the kernel."""
    def mm(a, b):
        if use_bf16:
            a = a.astype(jnp.bfloat16)          # weights are already bf16
        return jnp.dot(a, b, preferred_element_type=jnp.float32)

    u = _antideriv_tanh(mm(xc_ref[...], w0_ref[...]) + b0_ref[...])

    def body(i, u):
        z = mm(u, wres_ref[i]) + bres_ref[i]
        return u + h * _antideriv_tanh(z)

    u = lax.fori_loop(0, n_res, body, u, unroll=(n_res <= 8))
    m_out = out_ref.shape[1]
    out_ref[...] = u[:, :m_out].astype(out_ref.dtype)


def _resnn_streaming_kernel(xc_ref, w0_ref, b0_ref, wres_ref, bres_ref, out_ref,
                            u_acc, *, h, use_bf16):
    """Residual weights streamed one layer per grid step; u lives in scratch."""
    def mm(a, b):
        if use_bf16:
            a = a.astype(jnp.bfloat16)
        return jnp.dot(a, b, preferred_element_type=jnp.float32)

    layer = pl.program_id(1)
    n_layers = pl.num_programs(1)

    @pl.when(layer == 0)
    def _():
        u_acc[...] = _antideriv_tanh(mm(xc_ref[...], w0_ref[...]) + b0_ref[...])

    @pl.when(layer > 0)
    def _():
        z = mm(u_acc[...], wres_ref[0]) + bres_ref[0]
        u_acc[...] = u_acc[...] + h * _antideriv_tanh(z)

    @pl.when(layer == n_layers - 1)
    def _():
        m_out = out_ref.shape[1]
        out_ref[...] = u_acc[...][:, :m_out].astype(out_ref.dtype)


# --------------------------------------------------------------------------- #
# Wrapper
# --------------------------------------------------------------------------- #
def _choose_tile(nex8, per_row_bytes, avail_bytes, m_pad):
    # Big tiles for small m (amortize ~0.35us/step), smaller when m is large.
    if m_pad <= 256:
        cap = 4096
    elif m_pad <= 512:
        cap = 2048
    elif m_pad <= 1024:
        cap = 1024
    else:
        cap = 512
    tile = avail_bytes // max(per_row_bytes, 1)
    tile = min(tile, cap, nex8)
    tile = max(8, (int(tile) // 8) * 8)
    # Give the second TensorCore (v7x) work when there is enough batch.
    if nex8 >= 16 and -(-nex8 // tile) < 2:
        tile = max(8, _round_up((nex8 + 1) // 2, 8))
    return int(tile)


def resnn_forward(x, c, params, *, nTh,
                  use_bf16_matmul=None,
                  max_resident_weight_bytes=None,
                  vmem_budget_bytes=None):
    """x: (nex, d+1), c: (nex, cond) or None, params: dict (pre-transposed weights)."""
    assert nTh >= 2, "nTh must be an integer >= 2"
    x = jnp.asarray(x, jnp.float32)
    xc = x if c is None else jnp.concatenate([x, jnp.asarray(c, jnp.float32)], axis=-1)
    nex, k_in = xc.shape
    m = params["w0"].shape[1]
    n_res = nTh - 1
    h = 1.0 / (nTh - 1)

    # ---- chip-aware VMEM budget ---------------------------------------------
    try:
        phys_vmem = int(pltpu.get_tpu_info().vmem_capacity_bytes)
    except Exception:
        phys_vmem = 64 * 1024 * 1024          # conservative (v7x per-core)
    if vmem_budget_bytes is None:
        vmem_budget_bytes = min(phys_vmem - (16 << 20), 100 << 20)
    if max_resident_weight_bytes is None:
        max_resident_weight_bytes = int(0.6 * vmem_budget_bytes)

    # ---- lane / sublane padding (zero padding -> isolated padded lanes) ------
    m_pad = _round_up(m, 128)
    k_pad = _round_up(k_in, 8)
    w0 = _pad_axis(_pad_axis(jnp.asarray(params["w0"], jnp.float32), 0, k_pad), 1, m_pad)
    b0 = _pad_axis(jnp.asarray(params["b0"], jnp.float32), 1, m_pad)
    w_res = _pad_axis(_pad_axis(jnp.asarray(params["w_res"], jnp.float32), 1, m_pad), 2, m_pad)
    b_res = _pad_axis(jnp.asarray(params["b_res"], jnp.float32), 2, m_pad)
    xc = _pad_axis(xc, 1, k_pad)

    if use_bf16_matmul is None:
        use_bf16_matmul = m_pad >= 512        # f32 MXU becomes the bound for large m
    if use_bf16_matmul:
        w0 = w0.astype(jnp.bfloat16)          # pre-cast once in the wrapper
        w_res = w_res.astype(jnp.bfloat16)
    wbytes = 2 if use_bf16_matmul else 4

    weight_bytes = (k_pad * m_pad + n_res * m_pad * m_pad) * wbytes \
                   + (1 + n_res) * m_pad * 4
    resident = weight_bytes <= max_resident_weight_bytes

    # ---- batch tiling ---------------------------------------------------------
    nex8 = _round_up(nex, 8)
    if resident:
        weight_vmem = weight_bytes                                    # Buffered(1)
    else:
        weight_vmem = 2 * (m_pad * m_pad * wbytes + m_pad * 4) \
                      + k_pad * m_pad * wbytes + m_pad * 4
    per_row = 4 * (2 * k_pad + 2 * m) + 5 * 4 * m_pad   # I/O tiles + live activations
    avail = max(vmem_budget_bytes - weight_vmem, 1 << 20)
    tile = _choose_tile(nex8, per_row, avail, m_pad)
    nex_pad = _round_up(nex8, tile)
    xc = _pad_axis(xc, 0, nex_pad)
    n_tiles = nex_pad // tile

    # ---- cost estimate & VMEM limit -------------------------------------------
    flops = 2 * nex_pad * (k_pad * m_pad + n_res * m_pad * m_pad)
    transcendentals = 2 * nex_pad * m_pad * nTh
    bytes_accessed = 4 * nex_pad * (k_pad + m) + weight_bytes * (1 if resident else n_tiles)
    cost = pl.CostEstimate(flops=int(flops), transcendentals=int(transcendentals),
                           bytes_accessed=int(bytes_accessed))

    est_vmem = (weight_vmem + 2 * tile * k_pad * 4 + 2 * tile * m * 4
                + 5 * tile * m_pad * 4)
    vmem_limit = int(min(max(2 * est_vmem + (4 << 20), 16 << 20),
                         phys_vmem - (8 << 20)))

    out_shape = jax.ShapeDtypeStruct((nex_pad, m), jnp.float32)

    if resident:
        kernel = functools.partial(_resnn_resident_kernel, n_res=n_res, h=h,
                                   use_bf16=use_bf16_matmul)
        grid = (n_tiles,)
        in_specs = [
            pl.BlockSpec((tile, k_pad), lambda i: (i, 0)),
            _const_block_spec((k_pad, m_pad), lambda i: (0, 0)),
            _const_block_spec((1, m_pad), lambda i: (0, 0)),
            _const_block_spec((n_res, m_pad, m_pad), lambda i: (0, 0, 0)),
            _const_block_spec((n_res, 1, m_pad), lambda i: (0, 0, 0)),
        ]
        out_spec = pl.BlockSpec((tile, m), lambda i: (i, 0))
        scratch = []
        dims = ("parallel",)
    else:
        kernel = functools.partial(_resnn_streaming_kernel, h=h,
                                   use_bf16=use_bf16_matmul)
        grid = (n_tiles, nTh)
        in_specs = [
            pl.BlockSpec((tile, k_pad), lambda i, l: (i, 0)),
            _const_block_spec((k_pad, m_pad), lambda i, l: (0, 0)),
            _const_block_spec((1, m_pad), lambda i, l: (0, 0)),
            pl.BlockSpec((1, m_pad, m_pad), lambda i, l: (jnp.maximum(l - 1, 0), 0, 0)),
            pl.BlockSpec((1, 1, m_pad), lambda i, l: (jnp.maximum(l - 1, 0), 0, 0)),
        ]
        out_spec = pl.BlockSpec((tile, m), lambda i, l: (i, 0))
        scratch = [pltpu.VMEM((tile, m_pad), jnp.float32)]
        dims = ("parallel", "arbitrary")

    out = pl.pallas_call(
        kernel,
        out_shape=out_shape,
        grid=grid,
        in_specs=in_specs,
        out_specs=out_spec,
        scratch_shapes=scratch,
        compiler_params=pltpu.CompilerParams(
            dimension_semantics=dims,
            vmem_limit_bytes=vmem_limit,
        ),
        cost_estimate=cost,
    )(xc, w0, b0, w_res, b_res)

    return out if nex_pad == nex else out[:nex]


# --------------------------------------------------------------------------- #
# Reference & init
# --------------------------------------------------------------------------- #
def resnn_reference(x, c, params, *, nTh):
    """Pure-JAX reference mirroring the PyTorch forward."""
    xc = x if c is None else jnp.concatenate([x, c], axis=-1)
    h = 1.0 / (nTh - 1)
    u = _antideriv_tanh(xc @ params["w0"] + params["b0"])
    for i in range(nTh - 1):
        u = u + h * _antideriv_tanh(u @ params["w_res"][i] + params["b_res"][i])
    return u


def init_params(key, d, m, nTh, conditional_dim):
    """Deterministic init mimicking nn.Linear (uniform +-1/sqrt(fan_in)).

    PyTorch deep-copies layers[1] for layers 2..nTh-1; we keep the general
    stacked (n_res, m, m) layout (identical values at init, distinct supported).
    Weights stored pre-transposed as [in_features, out_features].
    """
    in0 = d + 1 + conditional_dim
    k0, k1, k2, k3 = jax.random.split(key, 4)
    bound0 = 1.0 / math.sqrt(in0)
    bound1 = 1.0 / math.sqrt(m)
    w1 = jax.random.uniform(k2, (m, m), jnp.float32, -bound1, bound1)
    b1 = jax.random.uniform(k3, (1, m), jnp.float32, -bound1, bound1)
    n_res = nTh - 1
    return {
        "w0": jax.random.uniform(k0, (in0, m), jnp.float32, -bound0, bound0),
        "b0": jax.random.uniform(k1, (1, m), jnp.float32, -bound0, bound0),
        "w_res": jnp.tile(w1[None], (n_res, 1, 1)),
        "b_res": jnp.tile(b1[None], (n_res, 1, 1)),
    }


if __name__ == "__main__":
    d, m, nTh, cond = 3, 32, 2, 2
    nex = 8

    key = jax.random.PRNGKey(0)
    kx, kc, kp = jax.random.split(key, 3)
    x = jax.random.normal(kx, (nex, d + 1), jnp.float32)   # space-time input
    c = jax.random.normal(kc, (nex, cond), jnp.float32)    # conditional input
    params = init_params(kp, d, m, nTh, cond)

    out = jax.block_until_ready(resnn_forward(x, c, params, nTh=nTh))
    ref = resnn_reference(x, c, params, nTh=nTh)
    assert out.shape == (nex, m)
    assert jnp.allclose(out, ref, atol=1e-5, rtol=1e-5), "mismatch (conditional)"

    # Unconditional (c=None) path.
    params_nc = init_params(kp, d, m, nTh, 0)
    out_nc = jax.block_until_ready(resnn_forward(x, None, params_nc, nTh=nTh))
    ref_nc = resnn_reference(x, None, params_nc, nTh=nTh)
    assert jnp.allclose(out_nc, ref_nc, atol=1e-5, rtol=1e-5), "mismatch (c=None)"

    # Layer-streaming path (forced) with >1 residual layer and padded batch.
    nTh2, nex2 = 3, 24
    k1, k2, k3 = jax.random.split(jax.random.PRNGKey(1), 3)
    x2 = jax.random.normal(k1, (nex2, d + 1), jnp.float32)
    c2 = jax.random.normal(k2, (nex2, cond), jnp.float32)
    params2 = init_params(k3, d, m, nTh2, cond)
    out2 = jax.block_until_ready(
        resnn_forward(x2, c2, params2, nTh=nTh2, max_resident_weight_bytes=0))
    ref2 = resnn_reference(x2, c2, params2, nTh=nTh2)
    assert out2.shape == (nex2, m)
    assert jnp.allclose(out2, ref2, atol=1e-5, rtol=1e-5), "mismatch (streaming)"

    print("KERNEL_OK")
</pallas_src>

<mosaic_0001>
module attributes {stable_mosaic.version = 11 : i64} {
  func.func @_resnn_resident_kernel(%arg0: i32, %arg1: memref<8x8xf32, #tpu.memory_space<vmem>>, %arg2: memref<8x128xf32, #tpu.memory_space<vmem>>, %arg3: memref<1x128xf32, #tpu.memory_space<vmem>>, %arg4: memref<1x128x128xf32, #tpu.memory_space<vmem>>, %arg5: memref<1x1x128xf32, #tpu.memory_space<vmem>>, %arg6: memref<8x32xf32, #tpu.memory_space<vmem>>) attributes {dimension_semantics = [#tpu.dimension_semantics<parallel>], iteration_bounds = array<i64: 1>, scalar_prefetch = 0 : i64, scratch_operands = 0 : i64, tpu.core_type = #tpu.core_type<tc>, window_params = [{transform_indices = @transform_0, window_bounds = array<i64: 8, 8>}, {pipeline_mode = #tpu.pipeline_mode<synchronous>, transform_indices = @transform_1, window_bounds = array<i64: 8, 128>}, {pipeline_mode = #tpu.pipeline_mode<synchronous>, transform_indices = @transform_2, window_bounds = array<i64: 1, 128>}, {pipeline_mode = #tpu.pipeline_mode<synchronous>, transform_indices = @transform_3, window_bounds = array<i64: 1, 128, 128>}, {pipeline_mode = #tpu.pipeline_mode<synchronous>, transform_indices = @transform_4, window_bounds = array<i64: 1, 1, 128>}, {transform_indices = @transform_5, window_bounds = array<i64: 8, 32>}]} {
    %c0 = arith.constant 0 : index
    %c0_0 = arith.constant 0 : index
    %0 = vector.load %arg1[%c0, %c0_0] : memref<8x8xf32, #tpu.memory_space<vmem>>, vector<8x8xf32>
    %c0_1 = arith.constant 0 : index
    %c0_2 = arith.constant 0 : index
    %1 = vector.load %arg2[%c0_1, %c0_2] : memref<8x128xf32, #tpu.memory_space<vmem>>, vector<8x128xf32>
    %cst = arith.constant dense<0.000000e+00> : vector<8x128xf32>
    %2 = tpu.matmul %0, %1, %cst {dimension_numbers = #tpu.dot_dimension_numbers<[1], [0], [0], [1], [0, 0, 1, 1], [], []>} : vector<8x8xf32>, vector<8x128xf32>, vector<8x128xf32> -> vector<8x128xf32>
    %c0_3 = arith.constant 0 : index
    %c0_4 = arith.constant 0 : index
    %3 = vector.load %arg3[%c0_3, %c0_4] : memref<1x128xf32, #tpu.memory_space<vmem>>, vector<1x128xf32>
    %4 = vector.broadcast %3 : vector<1x128xf32> to vector<8x128xf32>
    %5 = arith.addf %2, %4 : vector<8x128xf32>
    %6 = math.absf %5 : vector<8x128xf32>
    %cst_5 = arith.constant -2.000000e+00 : f32
    %7 = vector.broadcast %cst_5 : f32 to vector<8x128xf32>
    %8 = arith.mulf %7, %6 : vector<8x128xf32>
    %9 = math.exp %8 : vector<8x128xf32>
    %10 = math.log1p %9 : vector<8x128xf32>
    %11 = arith.addf %6, %10 : vector<8x128xf32>
    %c0_i32 = arith.constant 0 : i32
    %12 = arith.index_cast %c0_i32 : i32 to index
    %c0_6 = arith.constant 0 : index
    %c0_7 = arith.constant 0 : index
    %13 = vector.load %arg4[%12, %c0_6, %c0_7] : memref<1x128x128xf32, #tpu.memory_space<vmem>>, vector<1x128x128xf32>
    %14 = vector.shape_cast %13 : vector<1x128x128xf32> to vector<128x128xf32>
    %cst_8 = arith.constant dense<0.000000e+00> : vector<8x128xf32>
    %15 = tpu.matmul %11, %14, %cst_8 {dimension_numbers = #tpu.dot_dimension_numbers<[1], [0], [0], [1], [0, 0, 1, 1], [], []>} : vector<8x128xf32>, vector<128x128xf32>, vector<8x128xf32> -> vector<8x128xf32>
    %16 = arith.index_cast %c0_i32 : i32 to index
    %c0_9 = arith.constant 0 : index
    %c0_10 = arith.constant 0 : index
    %17 = vector.load %arg5[%16, %c0_9, %c0_10] : memref<1x1x128xf32, #tpu.memory_space<vmem>>, vector<1x1x128xf32>
    %18 = vector.shape_cast %17 : vector<1x1x128xf32> to vector<1x128xf32>
    %19 = vector.broadcast %18 : vector<1x128xf32> to vector<8x128xf32>
    %20 = arith.addf %15, %19 : vector<8x128xf32>
    %21 = math.absf %20 : vector<8x128xf32>
    %cst_11 = arith.constant -2.000000e+00 : f32
    %22 = vector.broadcast %cst_11 : f32 to vector<8x128xf32>
    %23 = arith.mulf %22, %21 : vector<8x128xf32>
    %24 = math.exp %23 : vector<8x128xf32>
    %25 = math.log1p %24 : vector<8x128xf32>
    %26 = arith.addf %21, %25 : vector<8x128xf32>
    %cst_12 = arith.constant 1.000000e+00 : f32
    %27 = vector.broadcast %cst_12 : f32 to vector<8x128xf32>
    %28 = arith.mulf %27, %26 : vector<8x128xf32>
    %29 = arith.addf %11, %28 : vector<8x128xf32>
    %c1_i32 = arith.constant 1 : i32
    %30 = vector.extract_strided_slice %29 {offsets = [0, 0], sizes = [8, 32], strides = [1, 1]} : vector<8x128xf32> to vector<8x32xf32>
    %c0_13 = arith.constant 0 : index
    %c0_14 = arith.constant 0 : index
    %31 = vector.load %arg6[%c0_13, %c0_14] : memref<8x32xf32, #tpu.memory_space<vmem>>, vector<8x32xf32>
    tpu.vector_store %arg6[%c0_13, %c0_14], %30 {strides = array<i32>} : memref<8x32xf32, #tpu.memory_space<vmem>>, vector<8x32xf32>,
    return
  }
  func.func @transform_0(%arg0: i32) -> (i32, i32) {
    %c0_i32 = arith.constant 0 : i32
    %c0_i32_0 = arith.constant 0 : i32
    return %arg0, %c0_i32 : i32, i32
  }
  func.func @transform_1(%arg0: i32) -> (i32, i32) {
    %c0_i32 = arith.constant 0 : i32
    %c0_i32_0 = arith.constant 0 : i32
    %c0_i32_1 = arith.constant 0 : i32
    return %c0_i32, %c0_i32_0 : i32, i32
  }
  func.func @transform_2(%arg0: i32) -> (i32, i32) {
    %c0_i32 = arith.constant 0 : i32
    %c0_i32_0 = arith.constant 0 : i32
    %c0_i32_1 = arith.constant 0 : i32
    return %c0_i32, %c0_i32_0 : i32, i32
  }
  func.func @transform_3(%arg0: i32) -> (i32, i32, i32) {
    %c0_i32 = arith.constant 0 : i32
    %c0_i32_0 = arith.constant 0 : i32
    %c0_i32_1 = arith.constant 0 : i32
    %c0_i32_2 = arith.constant 0 : i32
    return %c0_i32, %c0_i32_0, %c0_i32_1 : i32, i32, i32
  }
  func.func @transform_4(%arg0: i32) -> (i32, i32, i32) {
    %c0_i32 = arith.constant 0 : i32
    %c0_i32_0 = arith.constant 0 : i32
    %c0_i32_1 = arith.constant 0 : i32
    %c0_i32_2 = arith.constant 0 : i32
    return %c0_i32, %c0_i32_0, %c0_i32_1 : i32, i32, i32
  }
  func.func @transform_5(%arg0: i32) -> (i32, i32) {
    %c0_i32 = arith.constant 0 : i32
    %c0_i32_0 = arith.constant 0 : i32
    return %arg0, %c0_i32 : i32, i32
  }
}

</mosaic_0001>

<bundles_post_ra>
// kernel: tpu_custom_call.1
= control target key start
LH: loop header
LB: loop body
LE: loop exit
PB: predicated region body
PF: predicated region fallthrough
CT: control target
= control target key end

     0   :  { %10 = vsyncpa [#allocation3], 0  ;;  %s356_s0 = inlined_call_operand.hbm [shape: f32[8,8], index: 0, kind: input, shape index: {}]   ;;  %s357_s1 = inlined_call_operand.hbm [shape: f32[8,128], index: 1, kind: input, shape index: {}]   ;;  %s358_s2 = inlined_call_operand.vmem [shape: f32[1,128], index: 2, kind: input, shape index: {}]   ;;  %s359_s3 = inlined_call_operand.hbm [shape: f32[1,128,128], index: 3, kind: input, shape index: {}]   ;;  %s360_s4 = inlined_call_operand.vmem [shape: f32[1,1,128], index: 4, kind: input, shape index: {}]   ;;  %s361_s5 = inlined_call_operand.hbm [shape: f32[8,32], index: 5, kind: output, shape index: {}]  }
   0x1   :  { %11 = vsyncpa [#allocation6], 0  ;;  %s29_s20 = sshll.u32 %s357_s1, 4  ;;  %s30_s20 = int_to_ptr.hbm [resolvable:$true] %s29_s20 }
   0x2   :  { %12 = vsyncpa [#allocation4], 0  ;;  %s302_s21 = smov [#allocation5]   ;;  %s18_s25 = sshll.u32 %s356_s0, 4  ;;  %s19_s25 = int_to_ptr.hbm [resolvable:$true] %s18_s25 }
   0x3   :  { %s31_s22 = sshll.u32 %s302_s21, 4  ;;  %s303_s26 = smov [#allocation2]   ;;  %s32_s22 = int_to_ptr.vmem [resolvable:$true] %s31_s22 }
   0x4   :  { %34 = dma.hbm_to_vmem [thread:$0]  %s30_s20, 128, %s32_s22, [#allocation6]  }
   0x5   :  { %s20_s27 = sshll.u32 %s303_s26, 4  ;;  %s41_s30 = sshll.u32 %s359_s3, 4  ;;  %s21_s27 = int_to_ptr.vmem [resolvable:$true] %s20_s27  ;;  %s42_s30 = int_to_ptr.hbm [resolvable:$true] %s41_s30 }
   0x6   :  { %23 = dma.hbm_to_vmem [thread:$0]  %s19_s25, 128, %s21_s27, [#allocation3]  }
   0x7   :  { %s304_s1 = smov [#allocation7]   ;;  %s305_s7 = smov 128  }
   0x8   :  { %s43_s6 = sshll.u32 %s304_s1, 4  ;;  %s306_s8 = smov 8   ;;  %s44_s6 = int_to_ptr.vmem [resolvable:$true] %s43_s6 }
   0x9   :  { %49 = dma.hbm_to_vmem [thread:$0]  %s42_s30, 2048, %s44_s6, [#allocation6], %s305_s7, %s305_s7, %s306_s8  }
   0xa   :  { %296 = dma.done.wait [#allocation3], 128  }
   0xb   :  { %297 = vsyncadd [#allocation3], 4294967168 }
   0xc   :  { %298 = dma.done.wait [#allocation6], 2176  }
   0xd   :  { %299 = vsyncadd [#allocation6], 4294965120  ;;  %vm70_vm0 = vcmask 64512   ;;  %v65_v0 = vld [vmem:[#allocation5] sm:$0xff]  ;;  %v64_v1 = vld [vmem:[#allocation2] sm:$0xff]  ;;  %s307_s10 = smov [#allocation8]  }
   0xe   :  { %v123_v2 = vld [vmem:[#allocation7 + $0x78] sm:$0xff]  ;;  %89 = vmatpush.msra.mxu0 %v65_v0  ;;  %v122_v3 = vld [vmem:[#allocation7 + $0x70] sm:$0xff]  ;;  %v121_v4 = vld [vmem:[#allocation7 + $0x68] sm:$0xff]  ;;  %s170_s11 = sshll.u32 %s307_s10, 4  ;;  %s172_s13 = sshll.u32 %s361_s5, 4  ;;  %vm163_vm3 = vcmask 261120   ;;  %s171_s11 = int_to_ptr.vmem [resolvable:$true] %s170_s11  ;;  %s173_s13 = int_to_ptr.hbm [resolvable:$true] %s172_s13 }
   0xf   :  { %128 = vmatpush.msra.mxu1 %v123_v2  ;;  %183 = vmatmul.msk.f32.vlgmr.msra.gmra.mxu0 %vm70_vm0, %v64_v1  ;;  %v120_v5 = vld [vmem:[#allocation7 + $0x60] sm:$0xff]  ;;  %v119_v6 = vld [vmem:[#allocation7 + $0x58] sm:$0xff]  ;;  %v118_v7 = vld [vmem:[#allocation7 + $0x50] sm:$0xff] }
  0x10   :  { %v117_v8 = vld [vmem:[#allocation7 + $0x48] sm:$0xff]  ;;  %v116_v9 = vld [vmem:[#allocation7 + $0x40] sm:$0xff]  ;;  %v115_v10 = vld [vmem:[#allocation7 + $0x38] sm:$0xff] }
  0x11   :  { %129 = vmatpush.msra.mxu1 %v122_v3  ;;  %v114_v11 = vld [vmem:[#allocation7 + $0x30] sm:$0xff]  ;;  %v113_v12 = vld [vmem:[#allocation7 + $0x28] sm:$0xff]  ;;  %v112_v13 = vld [vmem:[#allocation7 + $0x20] sm:$0xff] }
  0x12   :  { %v111_v14 = vld [vmem:[#allocation7 + $0x18] sm:$0xff]  ;;  %v110_v15 = vld [vmem:[#allocation7 + $0x10] sm:$0xff]  ;;  %v109_v16 = vld [vmem:[#allocation7 + $0x8] sm:$0xff] }
  0x13   :  { %130 = vmatpush.msra.mxu1 %v121_v4  ;;  %v108_v17 = vld [vmem:[#allocation7] sm:$0xff]  ;;  %v190_v18 = vld [vmem:[%s358_s2] ss:$0 sm:$0xff] }
  0x14   :  { %v191_v34 = vld [vmem:[%s360_s4] ss:$0 sm:$0xff] }
  0x15   :  { %131 = vmatpush.msra.mxu1 %v120_v5 }
  0x17   :  { %132 = vmatpush.msra.mxu1 %v119_v6 }
  0x19   :  { %133 = vmatpush.msra.mxu1 %v118_v7 }
  0x1b   :  { %134 = vmatpush.msra.mxu1 %v117_v8 }
  0x1d   :  { %135 = vmatpush.msra.mxu1 %v116_v9 }
  0x1f   :  { %136 = vmatpush.msra.mxu1 %v115_v10 }
  0x21   :  { %137 = vmatpush.msra.mxu1 %v114_v11 }
  0x23   :  { %138 = vmatpush.msra.mxu1 %v113_v12 }
  0x25   :  { %139 = vmatpush.msra.mxu1 %v112_v13 }
  0x27   :  { %140 = vmatpush.msra.mxu1 %v111_v14 }
  0x29   :  { %141 = vmatpush.msra.mxu1 %v110_v15 }
  0x2b   :  { %142 = vmatpush.msra.mxu1 %v109_v16 }
  0x2d   :  { %143 = vmatpush.msra.mxu1 %v108_v17 }
  0x8c   :  { %v91_v19 = vpop.f32.mrf.mxu0 }
  0x8d   :  { %v92_v20 = vadd.f32 %v190_v18, %v91_v19 }
  0x8f   :  { %v94_v21 = vand.u32 2147483647, %v92_v20 }
  0x91   :  { %v95_v22 = vmul.f32 -2.0, %v94_v21 }
  0x93   :  { %v96_v23 = vmul.f32 1.442695, %v95_v22 }
  0x95   :  { %192 = vpow2.f32 %v96_v23 }
  0x9b   :  { %v193_v24 = vpop.eup %192 }
  0x9c   :  { %v98_v25 = vadd.f32 1.0, %v193_v24  ;;  %v101_v26 = vmul.f32 -0.5, %v193_v24  ;;  %v104_v28 = vand.u32 2147483647, %v193_v24 }
  0x9e   :  { %194 = vlog2.f32 %v98_v25  ;;  %v102_v27 = vadd.f32 1.0, %v101_v26  ;;  %vm105_vm1 = vcmp.lt.f32.partialorder %v104_v28, 0.0004427343 }
  0xa0   :  { %v103_v31 = vmul.f32 %v193_v24, %v102_v27 }
  0xa4   :  { %v195_v29 = vpop.eup %194 }
  0xa5   :  { %v100_v30 = vmul.f32 0.6931472, %v195_v29 }
  0xa7   :  { %v106_v32 = vsel %vm105_vm1, %v103_v31, %v100_v30 }
  0xa8   :  { %v107_v33 = vadd.f32 %v106_v32, %v94_v21 }
  0xaa   :  { %144 = vmatmul.f32.vlgmr.msra.gmra.mxu1 %v107_v33 }
 0x127   :  { %v145_v35 = vpop.f32.mrf.mxu1 }
 0x128   :  { %v146_v36 = vadd.f32 %v191_v34, %v145_v35 }
 0x12a   :  { %v148_v37 = vand.u32 2147483647, %v146_v36 }
 0x12c   :  { %v149_v38 = vmul.f32 -2.0, %v148_v37 }
 0x12e   :  { %v150_v39 = vmul.f32 1.442695, %v149_v38 }
 0x130   :  { %196 = vpow2.f32 %v150_v39 }
 0x136   :  { %v197_v40 = vpop.eup %196 }
 0x137   :  { %v152_v41 = vadd.f32 1.0, %v197_v40  ;;  %v155_v42 = vmul.f32 -0.5, %v197_v40  ;;  %v158_v44 = vand.u32 2147483647, %v197_v40 }
 0x139   :  { %198 = vlog2.f32 %v152_v41  ;;  %v156_v43 = vadd.f32 1.0, %v155_v42  ;;  %vm159_vm2 = vcmp.lt.f32.partialorder %v158_v44, 0.0004427343 }
 0x13b   :  { %v157_v47 = vmul.f32 %v197_v40, %v156_v43 }
 0x13f   :  { %v199_v45 = vpop.eup %198 }
 0x140   :  { %v154_v46 = vmul.f32 0.6931472, %v199_v45 }
 0x142   :  { %v160_v48 = vsel %vm159_vm2, %v157_v47, %v154_v46 }
 0x143   :  { %v161_v49 = vadd.f32 %v160_v48, %v148_v37 }
 0x145   :  { %v162_v50 = vadd.f32 %v161_v49, %v107_v33 }
 0x147   :  { %164 = vst.msk [vmem:[#allocation8] sm:$0xff] %vm163_vm3, %v162_v50 }
 0x148   :  { %175 = dma.vmem_to_hbm [thread:$0]  %s171_s11, 128, %s173_s13, [#allocation4]  }
 0x149   :  { %300 = dma.done.wait [#allocation4], 128  }
 0x14a   :  { %301 = vsyncadd [#allocation4], 4294967168 }
 0x14b   :  { %180 = vsyncpa [#allocation3], 1 }
 0x14c   :  { %181 = vsyncpa [#allocation6], 1 }
 0x14d   :  { %182 = vsyncpa [#allocation4], 1 }

</bundles_post_ra>
